<compile_context>
chip_gen: v7x
topology: tpu7x:2x2x1
jax: 0.10.0
libtpu: 0.0.40
codegen_flags: <defaults>
</compile_context>

<pallas_src>
import functools

import jax
import jax.numpy as jnp
from jax.experimental import pallas as pl
from jax.experimental.pallas import tpu as pltpu

IN_F, HID, OUT = 784, 256, 10
OUT_PAD = 128  # lane-dense padded fc2 width (multiple of 128)
MAX_BM = 512   # batch-tile cap (VMEM footprint ~3-4 MiB incl. double buffers)


def _round_up(n, m):
    return ((n + m - 1) // m) * m


def mlp_kernel(x_ref, w1_ref, b1_ref, w2_ref, b2_ref, o_ref):
    # fc1: cast x tile to bf16 in-register (VPU, hidden under MXU work);
    # (bm, 784)bf16 @ (784, 256)bf16 -> f32 accum; bias + ReLU in f32.
    xb = x_ref[...].astype(jnp.bfloat16)
    h = jnp.dot(xb, w1_ref[...], preferred_element_type=jnp.float32)
    h = jnp.maximum(h + b1_ref[...], 0.0)
    # fc2: (bm, 256)bf16 @ (256, 128)bf16 -> f32. Columns 10..127 of w2/b2 are
    # zero padding, so the extra lanes are numerically inert.
    y = jnp.dot(h.astype(jnp.bfloat16), w2_ref[...],
                preferred_element_type=jnp.float32)
    o_ref[...] = (y + b2_ref[...]).astype(o_ref.dtype)


def _pick_bm(B):
    """Largest useful batch tile: whole (8-padded) batch up to MAX_BM rows,
    otherwise roughly-even tiles near MAX_BM so tail padding stays tiny."""
    b8 = _round_up(max(B, 1), 8)
    if b8 <= MAX_BM:
        return b8
    steps = -(-b8 // MAX_BM)               # ceil(b8 / MAX_BM)
    return _round_up(-(-b8 // steps), 8)   # ceil(b8 / steps), 8-aligned


def prepare_params(w1, b1, w2, b2):
    """One-time parameter prep (hoisted out of the per-call path):
    bf16 weights for the MXU, f32 biases, fc2/b2 zero-padded to 128 lanes."""
    w2p = jnp.pad(w2, ((0, 0), (0, OUT_PAD - OUT)))
    b2p = jnp.pad(b2.reshape(1, OUT), ((0, 0), (0, OUT_PAD - OUT)))
    return (w1.astype(jnp.bfloat16),
            b1.reshape(1, HID).astype(jnp.float32),
            w2p.astype(jnp.bfloat16),
            b2p.astype(jnp.float32))


@functools.partial(jax.jit, static_argnames=("bm",))
def _forward_impl(x, w1b, b1f, w2b, b2f, bm):
    B = x.shape[0]
    B_pad = _round_up(B, bm)
    if B_pad != B:
        # Rare (only ragged tail); fused/scheduled by XLA since we are jitted.
        x = jnp.pad(x, ((0, B_pad - B), (0, 0)))

    out = pl.pallas_call(
        mlp_kernel,
        out_shape=jax.ShapeDtypeStruct((B_pad, OUT_PAD), jnp.float32),
        grid_spec=pltpu.PrefetchScalarGridSpec(
            num_scalar_prefetch=0,
            grid=(B_pad // bm,),
            in_specs=[
                pl.BlockSpec((bm, IN_F), lambda i: (i, 0)),      # x tile (f32)
                pl.BlockSpec((IN_F, HID), lambda i: (0, 0)),     # w1 (bf16)
                pl.BlockSpec((1, HID), lambda i: (0, 0)),        # b1 (f32)
                pl.BlockSpec((HID, OUT_PAD), lambda i: (0, 0)),  # w2 padded (bf16)
                pl.BlockSpec((1, OUT_PAD), lambda i: (0, 0)),    # b2 padded (f32)
            ],
            out_specs=pl.BlockSpec((bm, OUT_PAD), lambda i: (i, 0)),
        ),
        compiler_params=pltpu.CompilerParams(
            dimension_semantics=("parallel",),
        ),
    )(x, w1b, b1f, w2b, b2f)

    # Padded rows/columns are sliced off here; never expose the padded slab.
    return out[:B, :OUT]


def simple_nn_forward(x, prepared_params, *, bm=None):
    """x: (B, 784) f32; prepared_params from prepare_params()."""
    if bm is None:
        bm = _pick_bm(x.shape[0])
    # TODO(synk): on v7x (2 TensorCores) prefer an even grid length for large B
    # (e.g. halve bm) so both cores get equal step counts; left generation-agnostic here.
    return _forward_impl(x, *prepared_params, bm=bm)


def init_params(key):
    # Deterministic init mirroring PyTorch nn.Linear default (uniform +-1/sqrt(fan_in)).
    k1, k2, k3, k4 = jax.random.split(key, 4)
    bound1 = 1.0 / jnp.sqrt(jnp.float32(IN_F))
    bound2 = 1.0 / jnp.sqrt(jnp.float32(HID))
    w1 = jax.random.uniform(k1, (IN_F, HID), jnp.float32, -bound1, bound1)
    b1 = jax.random.uniform(k2, (1, HID), jnp.float32, -bound1, bound1)
    w2 = jax.random.uniform(k3, (HID, OUT), jnp.float32, -bound2, bound2)
    b2 = jax.random.uniform(k4, (1, OUT), jnp.float32, -bound2, bound2)
    return w1, b1, w2, b2


if __name__ == "__main__":
    key = jax.random.PRNGKey(0)
    kx, kp = jax.random.split(key)

    B = 12  # deliberately not a multiple of 8 to exercise the ragged-tail path
    x = jax.random.normal(kx, (B, IN_F), jnp.float32)
    w1, b1, w2, b2 = init_params(kp)

    prepared = prepare_params(w1, b1, w2, b2)  # one-time weight prep
    out = simple_nn_forward(x, prepared)
    out = jax.block_until_ready(out)
    assert out.shape == (B, OUT)

    # Reference with the same numerics as the kernel (bf16 MXU operands, f32 accum).
    xb, w1b, w2b = (a.astype(jnp.bfloat16) for a in (x, w1, w2))
    h_ref = jnp.maximum(
        jnp.dot(xb, w1b, preferred_element_type=jnp.float32) + b1, 0.0)
    ref_bf16 = jnp.dot(h_ref.astype(jnp.bfloat16), w2b,
                       preferred_element_type=jnp.float32) + b2
    assert jnp.allclose(out, ref_bf16, atol=5e-3, rtol=5e-3)

    # Loose sanity check against the full-f32 PyTorch-equivalent forward.
    ref_f32 = jnp.maximum(x @ w1 + b1, 0.0) @ w2 + b2
    assert jnp.allclose(out, ref_f32, atol=5e-2, rtol=5e-2)

    print("KERNEL_OK")
</pallas_src>

<mosaic_0001>
module attributes {stable_mosaic.version = 11 : i64} {
  func.func @mlp_kernel(%arg0: i32, %arg1: memref<16x784xf32, #tpu.memory_space<vmem>>, %arg2: memref<784x256xbf16, #tpu.memory_space<vmem>>, %arg3: memref<1x256xf32, #tpu.memory_space<vmem>>, %arg4: memref<256x128xbf16, #tpu.memory_space<vmem>>, %arg5: memref<1x128xf32, #tpu.memory_space<vmem>>, %arg6: memref<16x128xf32, #tpu.memory_space<vmem>>) attributes {dimension_semantics = [#tpu.dimension_semantics<parallel>], iteration_bounds = array<i64: 1>, scalar_prefetch = 0 : i64, scratch_operands = 0 : i64, tpu.core_type = #tpu.core_type<tc>, window_params = [{transform_indices = @transform_0, window_bounds = array<i64: 16, 784>}, {pipeline_mode = #tpu.pipeline_mode<synchronous>, transform_indices = @transform_1, window_bounds = array<i64: 784, 256>}, {pipeline_mode = #tpu.pipeline_mode<synchronous>, transform_indices = @transform_2, window_bounds = array<i64: 1, 256>}, {pipeline_mode = #tpu.pipeline_mode<synchronous>, transform_indices = @transform_3, window_bounds = array<i64: 256, 128>}, {pipeline_mode = #tpu.pipeline_mode<synchronous>, transform_indices = @transform_4, window_bounds = array<i64: 1, 128>}, {transform_indices = @transform_5, window_bounds = array<i64: 16, 128>}]} {
    %c0 = arith.constant 0 : index
    %c0_0 = arith.constant 0 : index
    %0 = vector.load %arg1[%c0, %c0_0] : memref<16x784xf32, #tpu.memory_space<vmem>>, vector<16x784xf32>
    %1 = arith.truncf %0 : vector<16x784xf32> to vector<16x784xbf16>
    %c0_1 = arith.constant 0 : index
    %c0_2 = arith.constant 0 : index
    %2 = vector.load %arg2[%c0_1, %c0_2] : memref<784x256xbf16, #tpu.memory_space<vmem>>, vector<784x256xbf16>
    %cst = arith.constant dense<0.000000e+00> : vector<16x256xf32>
    %3 = tpu.matmul %1, %2, %cst {dimension_numbers = #tpu.dot_dimension_numbers<[1], [0], [0], [1], [0, 0, 1, 1], [], []>} : vector<16x784xbf16>, vector<784x256xbf16>, vector<16x256xf32> -> vector<16x256xf32>
    %c0_3 = arith.constant 0 : index
    %c0_4 = arith.constant 0 : index
    %4 = vector.load %arg3[%c0_3, %c0_4] : memref<1x256xf32, #tpu.memory_space<vmem>>, vector<1x256xf32>
    %5 = vector.broadcast %4 : vector<1x256xf32> to vector<16x256xf32>
    %6 = arith.addf %3, %5 : vector<16x256xf32>
    %cst_5 = arith.constant 0.000000e+00 : f32
    %7 = vector.broadcast %cst_5 : f32 to vector<16x256xf32>
    %8 = arith.maximumf %6, %7 : vector<16x256xf32>
    %9 = arith.truncf %8 : vector<16x256xf32> to vector<16x256xbf16>
    %c0_6 = arith.constant 0 : index
    %c0_7 = arith.constant 0 : index
    %10 = vector.load %arg4[%c0_6, %c0_7] : memref<256x128xbf16, #tpu.memory_space<vmem>>, vector<256x128xbf16>
    %cst_8 = arith.constant dense<0.000000e+00> : vector<16x128xf32>
    %11 = tpu.matmul %9, %10, %cst_8 {dimension_numbers = #tpu.dot_dimension_numbers<[1], [0], [0], [1], [0, 0, 1, 1], [], []>} : vector<16x256xbf16>, vector<256x128xbf16>, vector<16x128xf32> -> vector<16x128xf32>
    %c0_9 = arith.constant 0 : index
    %c0_10 = arith.constant 0 : index
    %12 = vector.load %arg5[%c0_9, %c0_10] : memref<1x128xf32, #tpu.memory_space<vmem>>, vector<1x128xf32>
    %13 = vector.broadcast %12 : vector<1x128xf32> to vector<16x128xf32>
    %14 = arith.addf %11, %13 : vector<16x128xf32>
    %c0_11 = arith.constant 0 : index
    %c0_12 = arith.constant 0 : index
    %15 = vector.load %arg6[%c0_11, %c0_12] : memref<16x128xf32, #tpu.memory_space<vmem>>, vector<16x128xf32>
    tpu.vector_store %arg6[%c0_11, %c0_12], %14 {strides = array<i32>} : memref<16x128xf32, #tpu.memory_space<vmem>>, vector<16x128xf32>,
    return
  }
  func.func @transform_0(%arg0: i32) -> (i32, i32) {
    %c0_i32 = arith.constant 0 : i32
    %c0_i32_0 = arith.constant 0 : i32
    return %arg0, %c0_i32 : i32, i32
  }
  func.func @transform_1(%arg0: i32) -> (i32, i32) {
    %c0_i32 = arith.constant 0 : i32
    %c0_i32_0 = arith.constant 0 : i32
    %c0_i32_1 = arith.constant 0 : i32
    return %c0_i32, %c0_i32_0 : i32, i32
  }
  func.func @transform_2(%arg0: i32) -> (i32, i32) {
    %c0_i32 = arith.constant 0 : i32
    %c0_i32_0 = arith.constant 0 : i32
    %c0_i32_1 = arith.constant 0 : i32
    return %c0_i32, %c0_i32_0 : i32, i32
  }
  func.func @transform_3(%arg0: i32) -> (i32, i32) {
    %c0_i32 = arith.constant 0 : i32
    %c0_i32_0 = arith.constant 0 : i32
    %c0_i32_1 = arith.constant 0 : i32
    return %c0_i32, %c0_i32_0 : i32, i32
  }
  func.func @transform_4(%arg0: i32) -> (i32, i32) {
    %c0_i32 = arith.constant 0 : i32
    %c0_i32_0 = arith.constant 0 : i32
    %c0_i32_1 = arith.constant 0 : i32
    return %c0_i32, %c0_i32_0 : i32, i32
  }
  func.func @transform_5(%arg0: i32) -> (i32, i32) {
    %c0_i32 = arith.constant 0 : i32
    %c0_i32_0 = arith.constant 0 : i32
    return %arg0, %c0_i32 : i32, i32
  }
}

</mosaic_0001>

<bundles_post_ra>
// kernel: _forward_impl.1
= control target key start
LH: loop header
LB: loop body
LE: loop exit
PB: predicated region body
PF: predicated region fallthrough
CT: control target
= control target key end

     0   :  { %10 = vsyncpa [#allocation3], 0  ;;  %s1565_s0 = inlined_call_operand.vmem [shape: f32[16,784], index: 0, kind: input, shape index: {}]   ;;  %s1566_s1 = inlined_call_operand.hbm [shape: bf16[784,256], index: 1, kind: input, shape index: {}]   ;;  %s1567_s2 = inlined_call_operand.vmem [shape: f32[1,256], index: 2, kind: input, shape index: {}]   ;;  %s1568_s3 = inlined_call_operand.vmem [shape: bf16[256,128], index: 3, kind: input, shape index: {}]   ;;  %s1569_s4 = inlined_call_operand.vmem [shape: f32[1,128], index: 4, kind: input, shape index: {}]   ;;  %s1570_s5 = inlined_call_operand.hbm [shape: f32[16,128], index: 5, kind: output, shape index: {}]  }
   0x1   :  { %11 = vsyncpa [#allocation4], 0  ;;  %s1404_s18 = smov [#allocation2]   ;;  %s1356_s22 = scalar_lea.hbm %s1566_s1, 12544 }
   0x2   :  { %s19_s19 = sshll.u32 %s1404_s18, 4  ;;  %p1357_p0 = scmp.ne.s32.totalorder %s1566_s1, %s1356_s22  ;;  %s20_s19 = int_to_ptr.vmem [resolvable:$true] %s19_s19 }
   0x3   :  { %p1360_p1 = scmp.lt.u32.totalorder %s1356_s22, %s1566_s1 }
   0x5   :  { %p1362_p2 = pnand %p1360_p1, %p1357_p0 }
   0x7   :  { %1365 = shalt.err (!%p1362_p2)
}
   0x8   :  { %s1366_s27 = scalar_lea.vmem %s20_s19, 12544  ;;  %p1371_p4 = scmp.lt.s32.totalorder %s20_s19, %s20_s19 }
   0x9   :  { %p1367_p3 = scmp.ne.s32.totalorder %s20_s19, %s1366_s27  ;;  %p1372_p5 = scmp.lt.s32.totalorder %s1366_s27, %s1366_s27 }
   0xb   :  { %p1373_p6 = por %p1372_p5, %p1371_p4 }
   0xd   :  { %p1374_p7 = pnand %p1373_p6, %p1367_p3 }
   0xf   :  { %1377 = shalt.err (!%p1374_p7)
}
  0x10   :  { %s1405_s28 = smov 128   ;;  %s1406_s29 = smov 8  }
  0x11   :  { %25 = dma.hbm_to_vmem [thread:$0]  %s1566_s1, 12544, %s20_s19, [#allocation3], %s1405_s28, %s1405_s28, %s1406_s29  }
  0x12   :  { %1400 = dma.done.wait [#allocation3], 12544  }
  0x13   :  { %1401 = vsyncadd [#allocation3], 4294954752  ;;  %v1193_v0 = vld [vmem:[#allocation2 + $0x104] ss:$8 sps:$4 sm:$0xff]   ;;  %v1195_v1 = vld [vmem:[#allocation2 + $0x100] ss:$8 sps:$4 sm:$0xff]  }
  0x14   :  { %704 = vmatprep.subr.bf16.mxu0 %v1193_v0  ;;  %v1196_v2 = vld [vmem:[#allocation2 + $0x114] ss:$8 sps:$4 sm:$0xff]   ;;  %v1198_v3 = vld [vmem:[#allocation2 + $0x110] ss:$8 sps:$4 sm:$0xff]   ;;  %v1199_v4 = vld [vmem:[#allocation2 + $0x124] ss:$8 sps:$4 sm:$0xff]  }
  0x15   :  { %705 = vmatpush1.bf16.msra.mxu0 %v1195_v1  ;;  %v1201_v5 = vld [vmem:[#allocation2 + $0x120] ss:$8 sps:$4 sm:$0xff]   ;;  %v1202_v6 = vld [vmem:[#allocation2 + $0x134] ss:$8 sps:$4 sm:$0xff]   ;;  %v1204_v7 = vld [vmem:[#allocation2 + $0x130] ss:$8 sps:$4 sm:$0xff]  }
  0x16   :  { %706 = vmatprep.subr.bf16.mxu0 %v1196_v2  ;;  %v1205_v8 = vld [vmem:[#allocation2 + $0x144] ss:$8 sps:$4 sm:$0xff]   ;;  %v1207_v9 = vld [vmem:[#allocation2 + $0x140] ss:$8 sps:$4 sm:$0xff]   ;;  %v1208_v10 = vld [vmem:[#allocation2 + $0x154] ss:$8 sps:$4 sm:$0xff]  }
  0x17   :  { %v1210_v11 = vld [vmem:[#allocation2 + $0x150] ss:$8 sps:$4 sm:$0xff]   ;;  %v1235_v12 = vld [vmem:[#allocation2 + $0x4] ss:$8 sps:$4 sm:$0xff]   ;;  %v1237_v13 = vld [vmem:[#allocation2] ss:$8 sps:$4 sm:$0xff]  }
  0x18   :  { %v1211_v14 = vld [vmem:[#allocation2 + $0x164] ss:$8 sps:$4 sm:$0xff]   ;;  %661 = vmatprep.subr.bf16.mxu1 %v1235_v12  ;;  %v1241_v15 = vld [vmem:[#allocation2 + $0x14] ss:$8 sps:$4 sm:$0xff]   ;;  %v1243_v16 = vld [vmem:[#allocation2 + $0x10] ss:$8 sps:$4 sm:$0xff]  }
  0x19   :  { %707 = vmatpush1.bf16.msra.mxu0 %v1198_v3  ;;  %662 = vmatpush1.bf16.msra.mxu1 %v1237_v13  ;;  %v1213_v17 = vld [vmem:[#allocation2 + $0x160] ss:$8 sps:$4 sm:$0xff]   ;;  %v1214_v18 = vld [vmem:[#allocation2 + $0x174] ss:$8 sps:$4 sm:$0xff]   ;;  %v1247_v19 = vld [vmem:[#allocation2 + $0x24] ss:$8 sps:$4 sm:$0xff]  }
  0x1a   :  { %708 = vmatprep.subr.bf16.mxu0 %v1199_v4  ;;  %663 = vmatprep.subr.bf16.mxu1 %v1241_v15  ;;  %v39_v20 = vld [vmem:[%s1565_s0 + $0x18] sm:$0xff]  ;;  %v46_v21 = vld [vmem:[%s1565_s0 + $0x50] sm:$0xff]  ;;  %v1216_v24 = vld [vmem:[#allocation2 + $0x170] ss:$8 sps:$4 sm:$0xff]   ;;  %vm657_vm0 = vcmask 130048   ;;  %s1408_s19 = smov [#allocation5]  }
  0x1b   :  { %v1249_v22 = vld [vmem:[#allocation2 + $0x20] ss:$8 sps:$4 sm:$0xff]   ;;  %v53_v23 = vpack.c.bf16 %v46_v21, %v39_v20  ;;  %v1217_v25 = vld [vmem:[#allocation2 + $0x184] ss:$8 sps:$4 sm:$0xff]   ;;  %v1253_v26 = vld [vmem:[#allocation2 + $0x34] ss:$8 sps:$4 sm:$0xff]  }
  0x1c   :  { %v1255_v27 = vld [vmem:[#allocation2 + $0x30] ss:$8 sps:$4 sm:$0xff]   ;;  %v1219_v28 = vld [vmem:[#allocation2 + $0x180] ss:$8 sps:$4 sm:$0xff]   ;;  %v1259_v29 = vld [vmem:[#allocation2 + $0x44] ss:$8 sps:$4 sm:$0xff]  }
  0x1d   :  { %709 = vmatpush1.bf16.msra.mxu0 %v1201_v5  ;;  %664 = vmatpush1.bf16.msra.mxu1 %v1243_v16  ;;  %v1220_v30 = vld [vmem:[#allocation2 + $0x194] ss:$8 sps:$4 sm:$0xff]   ;;  %v1261_v31 = vld [vmem:[#allocation2 + $0x40] ss:$8 sps:$4 sm:$0xff]   ;;  %v1222_v32 = vld [vmem:[#allocation2 + $0x190] ss:$8 sps:$4 sm:$0xff]  }
  0x1e   :  { %710 = vmatprep.subr.bf16.mxu0 %v1202_v6  ;;  %665 = vmatprep.subr.bf16.mxu1 %v1247_v19  ;;  %v1265_v33 = vld [vmem:[#allocation2 + $0x54] ss:$8 sps:$4 sm:$0xff]   ;;  %v1223_v34 = vld [vmem:[#allocation2 + $0x1a4] ss:$8 sps:$4 sm:$0xff]   ;;  %v1267_v35 = vld [vmem:[#allocation2 + $0x50] ss:$8 sps:$4 sm:$0xff]  }
  0x1f   :  { %736 = vmatprep.mubr.bf16.mxu0 %v53_v23  ;;  %v1225_v36 = vld [vmem:[#allocation2 + $0x1a0] ss:$8 sps:$4 sm:$0xff]   ;;  %v1271_v37 = vld [vmem:[#allocation2 + $0x64] ss:$8 sps:$4 sm:$0xff]   ;;  %v1226_v38 = vld [vmem:[#allocation2 + $0x1b4] ss:$8 sps:$4 sm:$0xff]  }
  0x20   :  { %v1273_v39 = vld [vmem:[#allocation2 + $0x60] ss:$8 sps:$4 sm:$0xff]   ;;  %v1228_v40 = vld [vmem:[#allocation2 + $0x1b0] ss:$8 sps:$4 sm:$0xff]   ;;  %v1277_v41 = vld [vmem:[#allocation2 + $0x74] ss:$8 sps:$4 sm:$0xff]  }
  0x21   :  { %711 = vmatpush1.bf16.msra.mxu0 %v1204_v7  ;;  %666 = vmatpush1.bf16.msra.mxu1 %v1249_v22  ;;  %v1229_v42 = vld [vmem:[#allocation2 + $0x1c4] ss:$8 sps:$4 sm:$0xff]   ;;  %v1279_v43 = vld [vmem:[#allocation2 + $0x70] ss:$8 sps:$4 sm:$0xff]   ;;  %v1231_v44 = vld [vmem:[#allocation2 + $0x1c0] ss:$8 sps:$4 sm:$0xff]  }
  0x22   :  { %712 = vmatprep.subr.bf16.mxu0 %v1205_v8  ;;  %667 = vmatprep.subr.bf16.mxu1 %v1253_v26  ;;  %v1283_v45 = vld [vmem:[#allocation2 + $0x84] ss:$8 sps:$4 sm:$0xff]   ;;  %v1232_v46 = vld [vmem:[#allocation2 + $0x1d4] ss:$8 sps:$4 sm:$0xff]   ;;  %v1285_v47 = vld [vmem:[#allocation2 + $0x80] ss:$8 sps:$4 sm:$0xff]  }
  0x23   :  { %v1234_v48 = vld [vmem:[#allocation2 + $0x1d0] ss:$8 sps:$4 sm:$0xff]   ;;  %v1289_v49 = vld [vmem:[#allocation2 + $0x94] ss:$8 sps:$4 sm:$0xff]   ;;  %v1238_v50 = vld [vmem:[#allocation2 + $0x1e4] ss:$8 sps:$4 sm:$0xff]  }
  0x24   :  { %v1291_v51 = vld [vmem:[#allocation2 + $0x90] ss:$8 sps:$4 sm:$0xff]   ;;  %v1240_v52 = vld [vmem:[#allocation2 + $0x1e0] ss:$8 sps:$4 sm:$0xff]   ;;  %v1295_v53 = vld [vmem:[#allocation2 + $0xa4] ss:$8 sps:$4 sm:$0xff]  }
  0x25   :  { %713 = vmatpush1.bf16.msra.mxu0 %v1207_v9  ;;  %668 = vmatpush1.bf16.msra.mxu1 %v1255_v27  ;;  %v1244_v54 = vld [vmem:[#allocation2 + $0x1f4] ss:$8 sps:$4 sm:$0xff]   ;;  %v1246_v55 = vld [vmem:[#allocation2 + $0x1f0] ss:$8 sps:$4 sm:$0xff]   ;;  %v38_v56 = vld [vmem:[%s1565_s0 + $0x10] sm:$0xff]  ;;  %s1022_s20 = sshll.u32 %s1408_s19, 4  ;;  %s1023_s20 = int_to_ptr.vmem [resolvable:$true] %s1022_s20 }
  0x26   :  { %714 = vmatprep.subr.bf16.mxu0 %v1208_v10  ;;  %669 = vmatprep.subr.bf16.mxu1 %v1259_v29  ;;  %v1297_v57 = vld [vmem:[#allocation2 + $0xa0] ss:$8 sps:$4 sm:$0xff]   ;;  %v45_v58 = vld [vmem:[%s1565_s0 + $0x48] sm:$0xff]  ;;  %v1252_v60 = vld [vmem:[#allocation2 + $0x204] ss:$8 sps:$4 sm:$0xff]   ;;  %s1378_s21 = scalar_lea.vmem %s1023_s20, 256  ;;  %p1383_p9 = scmp.lt.s32.totalorder %s1023_s20, %s1023_s20 }
  0x27   :  { %v1301_v59 = vld [vmem:[#allocation2 + $0xb4] ss:$8 sps:$4 sm:$0xff]   ;;  %v52_v61 = vpack.c.bf16 %v45_v58, %v38_v56  ;;  %v1303_v62 = vld [vmem:[#allocation2 + $0xb0] ss:$8 sps:$4 sm:$0xff]   ;;  %v1250_v0 = vld [vmem:[#allocation2 + $0x200] ss:$8 sps:$4 sm:$0xff]   ;;  %p1379_p8 = scmp.ne.s32.totalorder %s1023_s20, %s1378_s21  ;;  %p1384_p10 = scmp.lt.s32.totalorder %s1378_s21, %s1378_s21 }
  0x28   :  { %v37_v63 = vld [vmem:[%s1565_s0 + $0x8] sm:$0xff]  ;;  %v1307_v1 = vld [vmem:[#allocation2 + $0xc4] ss:$8 sps:$4 sm:$0xff]   ;;  %v44_v2 = vld [vmem:[%s1565_s0 + $0x40] sm:$0xff] }
  0x29   :  { %715 = vmatpush1.bf16.msra.mxu0 %v1210_v11  ;;  %670 = vmatpush1.bf16.msra.mxu1 %v1261_v31  ;;  %v1258_v3 = vld [vmem:[#allocation2 + $0x214] ss:$8 sps:$4 sm:$0xff]   ;;  %v51_v4 = vpack.c.bf16 %v44_v2, %v37_v63  ;;  %v1309_v5 = vld [vmem:[#allocation2 + $0xc0] ss:$8 sps:$4 sm:$0xff]   ;;  %v1256_v6 = vld [vmem:[#allocation2 + $0x210] ss:$8 sps:$4 sm:$0xff]   ;;  %p1385_p11 = por %p1384_p10, %p1383_p9 }
  0x2a   :  { %716 = vmatprep.subr.bf16.mxu0 %v1211_v14  ;;  %671 = vmatprep.subr.bf16.mxu1 %v1265_v33  ;;  %v1313_v7 = vld [vmem:[#allocation2 + $0xd4] ss:$8 sps:$4 sm:$0xff]   ;;  %v1264_v8 = vld [vmem:[#allocation2 + $0x224] ss:$8 sps:$4 sm:$0xff]   ;;  %v1262_v11 = vld [vmem:[#allocation2 + $0x220] ss:$8 sps:$4 sm:$0xff]  }
  0x2b   :  { %693 = vmatprep.mubr.bf16.mxu1 %v51_v4  ;;  %v41_v9 = vld [vmem:[%s1565_s0 + $0x28] sm:$0xff]  ;;  %v48_v10 = vld [vmem:[%s1565_s0 + $0x60] sm:$0xff]  ;;  %v1319_v14 = vld [vmem:[#allocation2 + $0xe4] ss:$8 sps:$4 sm:$0xff]   ;;  %v1407_v31 = vmov 0   ;;  %p1386_p12 = pnand %p1385_p11, %p1379_p8 }
  0x2c   :  { %v55_v12 = vpack.c.bf16 %v48_v10, %v41_v9  ;;  %v1315_v13 = vld [vmem:[#allocation2 + $0xd0] ss:$8 sps:$4 sm:$0xff]   ;;  %v1270_v15 = vld [vmem:[#allocation2 + $0x234] ss:$8 sps:$4 sm:$0xff]   ;;  %v43_v22 = vld [vmem:[%s1565_s0 + $0x38] sm:$0xff] }
  0x2d   :  { %717 = vmatpush1.bf16.msra.mxu0 %v1213_v17  ;;  %672 = vmatpush1.bf16.msra.mxu1 %v1267_v35  ;;  %v1268_v16 = vld [vmem:[#allocation2 + $0x230] ss:$8 sps:$4 sm:$0xff]   ;;  %v1276_v17 = vld [vmem:[#allocation2 + $0x244] ss:$8 sps:$4 sm:$0xff]   ;;  %v1325_v19 = vld [vmem:[#allocation2 + $0xf4] ss:$8 sps:$4 sm:$0xff]  }
  0x2e   :  { %718 = vmatprep.subr.bf16.mxu0 %v1214_v18  ;;  %673 = vmatprep.subr.bf16.mxu1 %v1271_v37  ;;  %v1321_v18 = vld [vmem:[#allocation2 + $0xe0] ss:$8 sps:$4 sm:$0xff]   ;;  %v1327_v20 = vld [vmem:[#allocation2 + $0xf0] ss:$8 sps:$4 sm:$0xff]   ;;  %v1294_v35 = vld [vmem:[#allocation2 + $0x274] ss:$8 sps:$4 sm:$0xff]  }
  0x2f   :  { %v36_v21 = vld [vmem:[%s1565_s0] sm:$0xff]  ;;  %v1274_v23 = vld [vmem:[#allocation2 + $0x240] ss:$8 sps:$4 sm:$0xff]   ;;  %v49_v33 = vld [vmem:[%s1565_s0 + $0x68] sm:$0xff] }
  0x30   :  { %v1334_v26 = vld [vmem:[#allocation2 + $0x300] ss:$8 sps:$4 sm:$0xff]   ;;  %v50_v27 = vpack.c.bf16 %v43_v22, %v36_v21  ;;  %v1340_v29 = vld [vmem:[%s1568_s3 + $0x40] sm:$0xff]   ;;  %v1350_v2 = vld [vmem:[%s1568_s3 + $0x68] sm:$0xff]  }
  0x31   :  { %719 = vmatpush1.bf16.msra.mxu0 %v1216_v24  ;;  %674 = vmatpush1.bf16.msra.mxu1 %v1273_v39  ;;  %v1336_v24 = vld [vmem:[#allocation2 + $0x304] ss:$8 sps:$4 sm:$0xff]   ;;  %v1341_v37 = vld [vmem:[%s1568_s3] sm:$0xff]   ;;  %v1342_v39 = vld [vmem:[%s1568_s3 + $0x48] sm:$0xff]  }
  0x32   :  { %720 = vmatprep.subr.bf16.mxu0 %v1217_v25  ;;  %675 = vmatprep.subr.bf16.mxu1 %v1277_v41  ;;  %v1282_v25 = vld [vmem:[#allocation2 + $0x254] ss:$8 sps:$4 sm:$0xff]   ;;  %v1331_v56 = vld [vmem:[#allocation2 + $0x2e0] ss:$8 sps:$4 sm:$0xff]   ;;  %v1337_v58 = vld [vmem:[#allocation2 + $0x2f0] ss:$8 sps:$4 sm:$0xff]  }
  0x33   :  { %v1343_v41 = vld [vmem:[%s1568_s3 + $0x8] sm:$0xff]   ;;  %v1347_v63 = vld [vmem:[%s1568_s3 + $0x18] sm:$0xff]   ;;  %v1352_v4 = vld [vmem:[%s1568_s3 + $0x70] sm:$0xff]  }
  0x35   :  { %721 = vmatpush1.bf16.msra.mxu0 %v1219_v28  ;;  %676 = vmatpush1.bf16.msra.mxu1 %v1279_v43  ;;  %v1280_v28 = vld [vmem:[#allocation2 + $0x250] ss:$8 sps:$4 sm:$0xff]   ;;  %v1344_v43 = vld [vmem:[%s1568_s3 + $0x50] sm:$0xff]  }
  0x36   :  { %722 = vmatprep.subr.bf16.mxu0 %v1220_v30  ;;  %677 = vmatprep.subr.bf16.mxu1 %v1283_v45  ;;  %v1288_v30 = vld [vmem:[#allocation2 + $0x264] ss:$8 sps:$4 sm:$0xff]  }
  0x37   :  { %v1345_v45 = vld [vmem:[%s1568_s3 + $0x10] sm:$0xff]  }
  0x39   :  { %723 = vmatpush1.bf16.msra.mxu0 %v1222_v32  ;;  %678 = vmatpush1.bf16.msra.mxu1 %v1285_v47  ;;  %v42_v32 = vld [vmem:[%s1565_s0 + $0x30] sm:$0xff] }
  0x3a   :  { %724 = vmatprep.subr.bf16.mxu0 %v1223_v34  ;;  %679 = vmatprep.subr.bf16.mxu1 %v1289_v49  ;;  %v1286_v34 = vld [vmem:[#allocation2 + $0x260] ss:$8 sps:$4 sm:$0xff]   ;;  %v1312_v47 = vld [vmem:[#allocation2 + $0x2a4] ss:$8 sps:$4 sm:$0xff]   ;;  %v1318_v49 = vld [vmem:[#allocation2 + $0x2b4] ss:$8 sps:$4 sm:$0xff]  }
  0x3d   :  { %725 = vmatpush1.bf16.msra.mxu0 %v1225_v36  ;;  %680 = vmatpush1.bf16.msra.mxu1 %v1291_v51  ;;  %v56_v36 = vpack.c.bf16 %v49_v33, %v42_v32  ;;  %v1324_v51 = vld [vmem:[#allocation2 + $0x2c4] ss:$8 sps:$4 sm:$0xff]  }
  0x3e   :  { %726 = vmatprep.subr.bf16.mxu0 %v1226_v38  ;;  %681 = vmatprep.subr.bf16.mxu1 %v1295_v53  ;;  %v1292_v38 = vld [vmem:[#allocation2 + $0x270] ss:$8 sps:$4 sm:$0xff]   ;;  %v1330_v53 = vld [vmem:[#allocation2 + $0x2d4] ss:$8 sps:$4 sm:$0xff]  }
  0x41   :  { %727 = vmatpush1.bf16.msra.mxu0 %v1228_v40  ;;  %682 = vmatpush1.bf16.msra.mxu1 %v1297_v57  ;;  %v1300_v40 = vld [vmem:[#allocation2 + $0x284] ss:$8 sps:$4 sm:$0xff]   ;;  %v1339_v57 = vld [vmem:[#allocation2 + $0x2f4] ss:$8 sps:$4 sm:$0xff]  }
  0x42   :  { %728 = vmatprep.subr.bf16.mxu0 %v1229_v42  ;;  %683 = vmatprep.subr.bf16.mxu1 %v1301_v59  ;;  %v1298_v42 = vld [vmem:[#allocation2 + $0x280] ss:$8 sps:$4 sm:$0xff]   ;;  %v40_v59 = vld [vmem:[%s1565_s0 + $0x20] sm:$0xff] }
  0x45   :  { %729 = vmatpush1.bf16.msra.mxu0 %v1231_v44  ;;  %684 = vmatpush1.bf16.msra.mxu1 %v1303_v62  ;;  %v1306_v44 = vld [vmem:[#allocation2 + $0x294] ss:$8 sps:$4 sm:$0xff]   ;;  %v1346_v62 = vld [vmem:[%s1568_s3 + $0x58] sm:$0xff]  }
  0x46   :  { %730 = vmatprep.subr.bf16.mxu0 %v1232_v46  ;;  %685 = vmatprep.subr.bf16.mxu1 %v1307_v1  ;;  %v1304_v46 = vld [vmem:[#allocation2 + $0x290] ss:$8 sps:$4 sm:$0xff]  }
  0x47   :  { %v1349_v1 = vld [vmem:[%s1568_s3 + $0x20] sm:$0xff]  }
  0x49   :  { %731 = vmatpush1.bf16.msra.mxu0 %v1234_v48  ;;  %686 = vmatpush1.bf16.msra.mxu1 %v1309_v5  ;;  %v1310_v48 = vld [vmem:[#allocation2 + $0x2a0] ss:$8 sps:$4 sm:$0xff]  }
  0x4a   :  { %732 = vmatprep.subr.bf16.mxu0 %v1238_v50  ;;  %687 = vmatprep.subr.bf16.mxu1 %v1313_v7  ;;  %v1316_v50 = vld [vmem:[#allocation2 + $0x2b0] ss:$8 sps:$4 sm:$0xff]   ;;  %v1353_v5 = vld [vmem:[%s1568_s3 + $0x30] sm:$0xff]   ;;  %v1355_v7 = vld [vmem:[%s1568_s3 + $0x38] sm:$0xff]  }
  0x4d   :  { %733 = vmatpush1.bf16.msra.mxu0 %v1240_v52  ;;  %688 = vmatpush1.bf16.msra.mxu1 %v1315_v13  ;;  %v1322_v52 = vld [vmem:[#allocation2 + $0x2c0] ss:$8 sps:$4 sm:$0xff]  }
  0x4e   :  { %734 = vmatprep.subr.bf16.mxu0 %v1244_v54  ;;  %689 = vmatprep.subr.bf16.mxu1 %v1319_v14  ;;  %v1328_v54 = vld [vmem:[#allocation2 + $0x2d0] ss:$8 sps:$4 sm:$0xff]  }
  0x51   :  { %735 = vmatpush1.bf16.msra.mxu0 %v1246_v55  ;;  %690 = vmatpush1.bf16.msra.mxu1 %v1321_v18  ;;  %v1333_v55 = vld [vmem:[#allocation2 + $0x2e4] ss:$8 sps:$4 sm:$0xff]  }
  0x52   :  { %747 = vmatprep.subr.bf16.mxu0 %v1252_v60  ;;  %691 = vmatprep.subr.bf16.mxu1 %v1325_v19  ;;  %v47_v60 = vld [vmem:[%s1565_s0 + $0x58] sm:$0xff]  ;;  %v155_v19 = vld [vmem:[%s1567_s2] sm:$0x3] }
  0x54   :  { %737 = vmatmul.mubr.bf16.vlgmr.msra.gmra.mrb[0].mxu0 %v52_v61  ;;  %v54_v61 = vpack.c.bf16 %v47_v60, %v40_v59 }
  0x55   :  { %748 = vmatpush1.bf16.msra.mxu0 %v1250_v0  ;;  %779 = vmatprep.mubr.bf16.mxu0 %v55_v12  ;;  %v1348_v0 = vld [vmem:[%s1568_s3 + $0x60] sm:$0xff]  }
  0x56   :  { %749 = vmatprep.subr.bf16.mxu0 %v1258_v3  ;;  %692 = vmatpush1.bf16.msra.mxu1 %v1327_v20  ;;  %v1351_v3 = vld [vmem:[%s1568_s3 + $0x28] sm:$0xff]  }
  0x57   :  { %790 = vmatprep.subr.bf16.mxu1 %v1336_v24 }
  0x59   :  { %750 = vmatpush1.bf16.msra.mxu0 %v1256_v6  ;;  %694 = vmatmul.mubr.bf16.vlgmr.msra.gmra.mrb[0].mxu1 %v50_v27  ;;  %v1354_v6 = vld [vmem:[%s1568_s3 + $0x78] sm:$0xff]  }
  0x5a   :  { %751 = vmatprep.subr.bf16.mxu0 %v1264_v8  ;;  %791 = vmatpush1.bf16.msra.mxu1 %v1334_v26 }
  0x5b   :  { %822 = vmatprep.mubr.bf16.mxu1 %v1407_v31  ;;  %1150 = vmatprep.subr.bf16.mxu1 %v1340_v29 }
  0x5d   :  { %752 = vmatpush1.bf16.msra.mxu0 %v1262_v11 }
  0x5e   :  { %753 = vmatprep.subr.bf16.mxu0 %v1270_v15 }
  0x61   :  { %754 = vmatpush1.bf16.msra.mxu0 %v1268_v16  ;;  %1132 = vmatmul.mubr.msk.bf16.vlgmr.msra.gmra.mrb[4].mxu1 %vm657_vm0, %v56_v36  ;;  %v157_v16 = vlaneseq }
  0x62   :  { %755 = vmatprep.subr.bf16.mxu0 %v1276_v17  ;;  %1151 = vmatpush3.bf16.msra.mxu1 %v1341_v37 }
  0x63   :  { %1152 = vmatprep.subr.bf16.mxu1 %v1342_v39  ;;  %v158_v17 = vshrl.u32 %v157_v16, 7 }
  0x65   :  { %756 = vmatpush1.bf16.msra.mxu0 %v1274_v23  ;;  %v159_v18 = vsub.s32 0, %v158_v17  ;;  %v163_v20 = vsub.s32 1, %v158_v17 }
  0x66   :  { %757 = vmatprep.subr.bf16.mxu0 %v1282_v25  ;;  %1153 = vmatpush3.bf16.msra.mxu1 %v1343_v41 }
  0x67   :  { %1154 = vmatprep.subr.bf16.mxu1 %v1344_v43  ;;  %v160_v21 = vrot.slane %v155_v19, %v159_v18  ;;  %v164_v22 = vrot.slane %v155_v19, %v163_v20 }
  0x69   :  { %758 = vmatpush1.bf16.msra.mxu0 %v1280_v28 }
  0x6a   :  { %759 = vmatprep.subr.bf16.mxu0 %v1288_v30  ;;  %1155 = vmatpush3.bf16.msra.mxu1 %v1345_v45 }
  0x6b   :  { %1156 = vmatprep.subr.bf16.mxu1 %v1346_v62 }
  0x6d   :  { %760 = vmatpush1.bf16.msra.mxu0 %v1286_v34 }
  0x6e   :  { %761 = vmatprep.subr.bf16.mxu0 %v1294_v35  ;;  %1157 = vmatpush3.bf16.msra.mxu1 %v1347_v63 }
  0x6f   :  { %1158 = vmatprep.subr.bf16.mxu1 %v1348_v0 }
  0x71   :  { %762 = vmatpush1.bf16.msra.mxu0 %v1292_v38 }
  0x72   :  { %763 = vmatprep.subr.bf16.mxu0 %v1300_v40  ;;  %1159 = vmatpush3.bf16.msra.mxu1 %v1349_v1 }
  0x73   :  { %1160 = vmatprep.subr.bf16.mxu1 %v1350_v2 }
  0x75   :  { %764 = vmatpush1.bf16.msra.mxu0 %v1298_v42 }
  0x76   :  { %765 = vmatprep.subr.bf16.mxu0 %v1306_v44  ;;  %1161 = vmatpush3.bf16.msra.mxu1 %v1351_v3 }
  0x77   :  { %1162 = vmatprep.subr.bf16.mxu1 %v1352_v4 }
  0x79   :  { %766 = vmatpush1.bf16.msra.mxu0 %v1304_v46  ;;  %v1133_v46 = vld [vmem:[%s1569_s4] ss:$0 sm:$0xff] }
  0x7a   :  { %767 = vmatprep.subr.bf16.mxu0 %v1312_v47  ;;  %1163 = vmatpush3.bf16.msra.mxu1 %v1353_v5 }
  0x7b   :  { %1164 = vmatprep.subr.bf16.mxu1 %v1354_v6 }
  0x7d   :  { %768 = vmatpush1.bf16.msra.mxu0 %v1310_v48 }
  0x7e   :  { %769 = vmatprep.subr.bf16.mxu0 %v1318_v49  ;;  %1165 = vmatpush3.bf16.msra.mxu1 %v1355_v7 }
  0x81   :  { %770 = vmatpush1.bf16.msra.mxu0 %v1316_v50 }
  0x82   :  { %771 = vmatprep.subr.bf16.mxu0 %v1324_v51 }
  0x85   :  { %772 = vmatpush1.bf16.msra.mxu0 %v1322_v52 }
  0x86   :  { %773 = vmatprep.subr.bf16.mxu0 %v1330_v53 }
  0x89   :  { %774 = vmatpush1.bf16.msra.mxu0 %v1328_v54 }
  0x8a   :  { %775 = vmatprep.subr.bf16.mxu0 %v1333_v55 }
  0x8d   :  { %776 = vmatpush1.bf16.msra.mxu0 %v1331_v56 }
  0x8e   :  { %777 = vmatprep.subr.bf16.mxu0 %v1339_v57 }
  0x91   :  { %778 = vmatpush1.bf16.msra.mxu0 %v1337_v58 }
  0x94   :  { %780 = vmatmul.mubr.bf16.vlgmr.msra.gmra.mrb[0].mxu0 %v54_v61 }
 0x12c   :  { %v695_v8 = vpop.f32.mrb[0].mxu1 }
 0x12d   :  { %v697_v9 = vpop.f32.mrb[1].mxu1  ;;  %v696_v23 = vadd.f32 %v695_v8, %v160_v21 }
 0x12e   :  { %v699_v10 = vpop.f32.mrb[2].mxu1  ;;  %v698_v24 = vadd.f32 %v697_v9, %v164_v22 }
 0x12f   :  { %v701_v11 = vpop.f32.mrb[3].mxu1  ;;  %v700_v26 = vadd.f32 %v699_v10, %v160_v21 }
 0x130   :  { %v702_v29 = vadd.f32 %v701_v11, %v164_v22 }
 0x134   :  { %v824_v12 = vpop.f32.mrb[4].mxu1 }
 0x135   :  { %v826_v13 = vpop.f32.mrb[5].mxu1 }
 0x136   :  { %v828_v14 = vpop.f32.mrb[6].mxu1 }
 0x137   :  { %v830_v15 = vpop.f32.mrb[7].mxu1 }
 0x167   :  { %v781_v25 = vpop.f32.mrb[0].mxu0 }
 0x168   :  { %v1173_v27 = vadd.f32 %v781_v25, %v696_v23  ;;  %v783_v28 = vpop.f32.mrb[1].mxu0 }
 0x169   :  { %v1176_v30 = vadd.f32 %v783_v28, %v698_v24  ;;  %v785_v31 = vpop.f32.mrb[2].mxu0 }
 0x16a   :  { %v1174_v32 = vadd.f32 %v1173_v27, %v824_v12  ;;  %v1179_v33 = vadd.f32 %v785_v31, %v700_v26  ;;  %v787_v34 = vpop.f32.mrb[3].mxu0 }
 0x16b   :  { %v1177_v35 = vadd.f32 %v1176_v30, %v826_v13  ;;  %v1182_v36 = vadd.f32 %v787_v34, %v702_v29 }
 0x16c   :  { %v1180_v37 = vadd.f32 %v1179_v33, %v828_v14  ;;  %v833_v39 = vmax.f32 %v1174_v32, 0.0 }
 0x16d   :  { %v1183_v38 = vadd.f32 %v1182_v36, %v830_v15  ;;  %v834_v41 = vmax.f32 %v1177_v35, 0.0 }
 0x16e   :  { %v835_v40 = vmax.f32 %v1180_v37, 0.0 }
 0x16f   :  { %v836_v42 = vmax.f32 %v1183_v38, 0.0 }
 0x170   :  { %v837_v43 = vpack.c.bf16 %v835_v40, %v833_v39 }
 0x171   :  { %v838_v44 = vpack.c.bf16 %v836_v42, %v834_v41 }
 0x173   :  { %1006 = vmatprep.mubr.bf16.mxu1 %v838_v44 }
 0x174   :  { %1007 = vmatmul.mubr.bf16.vlgmr.msra.gmra.mrb[8].mxu1 %v837_v43 }
 0x247   :  { %v1166_v45 = vpop.f32.mrb[8].mxu1 }
 0x248   :  { %v1167_v47 = vpop.f32.mrb[9].mxu1 }
 0x249   :  { %v1168_v48 = vadd.f32 %v1167_v47, %v1166_v45  ;;  %v1169_v49 = vpop.f32.mrb[10].mxu1 }
 0x24a   :  { %v1170_v50 = vpop.f32.mrb[11].mxu1 }
 0x24b   :  { %v1009_v51 = vadd.f32 %v1168_v48, %v1133_v46  ;;  %v1171_v52 = vadd.f32 %v1170_v50, %v1169_v49 }
 0x24d   :  { %1015 = vst [vmem:[#allocation5] sm:$0xff] %v1009_v51  ;;  %v1012_v53 = vadd.f32 %v1171_v52, %v1133_v46 }
 0x24f   :  { %1016 = vst [vmem:[#allocation5 + $0x8] sm:$0xff] %v1012_v53 }
 0x250   :  { %1389 = shalt.err (!%p1386_p12)
}
 0x251   :  { %s1390_s23 = scalar_lea.hbm %s1570_s5, 256 }
 0x252   :  { %p1391_p13 = scmp.ne.s32.totalorder %s1570_s5, %s1390_s23  ;;  %p1394_p0 = scmp.lt.u32.totalorder %s1390_s23, %s1570_s5 }
 0x254   :  { %p1396_p1 = pnand %p1394_p0, %p1391_p13 }
 0x256   :  { %1399 = shalt.err (!%p1396_p1)
}
 0x257   :  { %1028 = dma.vmem_to_hbm [thread:$0]  %s1023_s20, 256, %s1570_s5, [#allocation4], %s1405_s28, %s1405_s28, %s1406_s29  }
 0x258   :  { %1402 = dma.done.wait [#allocation4], 256  }
 0x259   :  { %1403 = vsyncadd [#allocation4], 4294967040 }
 0x25a   :  { %1032 = vsyncpa [#allocation3], 1 }
 0x25b   :  { %1033 = vsyncpa [#allocation4], 1 }

</bundles_post_ra>
